<compile_context>
chip_gen: v6e
topology: v6e:2x2x1
jax: 0.10.0
libtpu: 0.0.40
codegen_flags: <defaults>
</compile_context>

<pallas_src>
import functools
import math

import jax
import jax.numpy as jnp
import numpy as np
from jax import lax
from jax.experimental import pallas as pl
from jax.experimental.pallas import tpu as pltpu


def _round_up(x, m):
    return (x + m - 1) // m * m


def _vmem_limit_bytes():
    # Generation-aware scoped-VMEM budget: at most half the physical VMEM (v7x has
    # only 64 MiB), capped at 48 MiB (plenty of headroom on v5e/v6e's 128 MiB).
    try:
        cap = int(getattr(pltpu.get_tpu_info(), "vmem_capacity_bytes", 0))
    except Exception:
        cap = 0
    if cap <= 0:
        cap = 128 * 1024 * 1024
    return min(48 * 1024 * 1024, cap // 2)


def _choose_tq(n, cap):
    # Prefer the largest lane-aligned query tile (<= cap) that divides n exactly;
    # small n gets a single tile, large awkward n gets a zero-padded last tile.
    for cand in (512, 384, 256, 128):
        if cand <= cap and cand <= n and n % cand == 0:
            return cand
    if n <= 128:
        return n
    return 128 if (n < 256 or cap < 256) else 256


def _default_exp_dtype(mxu_dtype):
    # bf16 exp uses the bf16 EUP on v6e / v7x; older generations (and the f32 MXU
    # path) keep the exp in f32.
    if jnp.dtype(mxu_dtype) == jnp.dtype(jnp.float32):
        return jnp.float32
    try:
        kind = jax.devices()[0].device_kind.lower()
    except Exception:
        return jnp.float32
    if any(tok in kind for tok in ("v6", "v7", "7x")):
        return jnp.bfloat16
    return jnp.float32


# ---------------------------------------------------------------------------
# Kernel
# ---------------------------------------------------------------------------
def _attention_kernel(gamma_ref, x_ref, wfgh_ref, bfgh_ref, wv_ref, bv_ref,
                      out_ref,
                      f_scr, g_scr, h_scr, x0_scr,
                      *, seg, tq, n, nqt, mxu_dtype, exp_dtype, approx_recip):
    qi = pl.program_id(1)

    @pl.when(qi == 0)
    def _init():
        # x is read only here and in the finalize step (not on intermediate tiles).
        x = x_ref[0]                                                     # (C, N) f32
        # Fused f/g/h 1x1-conv projections: one (3*seg, C) @ (C, N) matmul.
        fgh = jnp.dot(wfgh_ref[...], x,
                      preferred_element_type=jnp.float32) + bfgh_ref[...]
        f = fgh[:seg].astype(mxu_dtype)                                  # (seg, N)
        g = fgh[seg:2 * seg].astype(mxu_dtype)                           # (seg, N)
        h = fgh[2 * seg:].astype(mxu_dtype)                              # (seg, N)
        g_scr[...] = g
        # f / h are stored as (nqt, seg, tq) chunks so each grid step fetches its
        # tile with a cheap leading-dim index (no dynamic lane slicing, no
        # per-batch full-N transpose).  Query positions >= n (padded last tile)
        # are zero-filled: zero h columns kill their contribution, zero f columns
        # keep the softmax statistics finite.
        for t in range(nqt):
            lo = t * tq
            w = min(n - lo, tq)
            if w == tq:
                f_scr[t] = f[:, lo:lo + tq]
                h_scr[t] = h[:, lo:lo + tq]
            else:
                zeros = jnp.zeros((seg, tq), dtype=mxu_dtype)
                f_scr[t] = zeros
                h_scr[t] = zeros
                f_scr[t, :, :w] = f[:, lo:lo + w]
                h_scr[t, :, :w] = h[:, lo:lo + w]
        x0_scr[...] = jnp.zeros_like(x0_scr)

    f_t = f_scr[qi]                                                      # (seg, tq)
    h_t = h_scr[qi]                                                      # (seg, tq)

    # scores[i, j] = <f[:, i], g[:, j]>  -- contract dim 0 of both operands
    # (trans-A MXU form); softmax rows over the full key range j.
    s = lax.dot_general(f_t, g_scr[...],
                        dimension_numbers=(((0,), (0,)), ((), ())),
                        preferred_element_type=jnp.float32)              # (tq, N) f32
    s = s - jnp.max(s, axis=-1, keepdims=True)
    p = jnp.exp(s.astype(exp_dtype))                                     # (tq, N)
    denom = jnp.sum(p, axis=-1, keepdims=True, dtype=jnp.float32)        # (tq, 1)
    # With the normalization folded into h, the reciprocal only touches tq values
    # per tile, so approx vs exact is purely an accuracy knob.
    inv = pl.reciprocal(denom, approx=True) if approx_recip else 1.0 / denom
    # Fold 1/denom into the small h tile (O(seg*tq)) instead of scaling the full
    # (tq, N) strip (O(tq*N)): per-row scales commute through the h @ p contraction.
    h_scaled = (h_t * inv.T).astype(mxu_dtype)                           # (seg, tq)

    # x0[:, j] += sum_{i in tile} h[:, i]/denom[i] * exp(s[i, j])
    x0_scr[...] += jnp.dot(h_scaled, p.astype(mxu_dtype),
                           preferred_element_type=jnp.float32)           # (seg, N)

    @pl.when(qi == nqt - 1)
    def _finalize():
        x = x_ref[0]                                                     # (C, N) f32
        v = jnp.dot(wv_ref[...], x0_scr[...],
                    preferred_element_type=jnp.float32) + bv_ref[...]    # (C, N)
        out_ref[0] = v * gamma_ref[0] + x


# ---------------------------------------------------------------------------
# Wrapper
# ---------------------------------------------------------------------------
def attention_layer(x_nchw, params, *, mxu_dtype=jnp.bfloat16, tq=None,
                    exp_dtype=None, approx_recip=None, interpret=False):
    """Fused SAGAN self-attention forward: out = vconv(h @ softmax(f^T g)) * gamma + x."""
    wf, bf, wg, bg, wh, bh, wv, bv, gamma = params
    B, C, W, H = x_nchw.shape
    assert C >= 8, "in_channels must be >= 8 (C // 8 projection channels)"
    N = W * H
    C8 = C // 8
    seg = _round_up(C8, 8)    # sublane-aligned segment size for the fused projection

    # Fuse the three projections and zero-pad each segment (plus wv's input dim) to
    # `seg` rows so the in-kernel f/g/h splits land on (8, 128) tile boundaries.
    # Zero-padded channels contribute exactly zero everywhere.
    def _pad(w, b):
        return (jnp.pad(w, ((0, seg - C8), (0, 0))),
                jnp.pad(b.reshape(C8, 1), ((0, seg - C8), (0, 0))))

    (wf_p, bf_p), (wg_p, bg_p), (wh_p, bh_p) = _pad(wf, bf), _pad(wg, bg), _pad(wh, bh)
    wfgh = jnp.concatenate([wf_p, wg_p, wh_p], axis=0)         # (3*seg, C)
    bfgh = jnp.concatenate([bf_p, bg_p, bh_p], axis=0)         # (3*seg, 1)
    wv_p = jnp.pad(wv, ((0, 0), (0, seg - C8)))                # (C, seg)
    bv_p = bv.reshape(C, 1)

    x = x_nchw.reshape(B, C, N)       # NCHW -> (B, C, N): free reshape, no transpose

    vmem_limit = _vmem_limit_bytes()                  # generation aware (v7x: 32 MiB)
    cap = 256 if vmem_limit <= 32 * 1024 * 1024 else 512
    if tq is not None:
        cap = min(cap, int(tq))
    tq_eff = _choose_tq(N, cap)
    nqt = pl.cdiv(N, tq_eff)

    if exp_dtype is None:
        exp_dtype = _default_exp_dtype(mxu_dtype)
    if approx_recip is None:
        approx_recip = jnp.dtype(mxu_dtype) != jnp.dtype(jnp.float32)

    kernel = functools.partial(
        _attention_kernel, seg=seg, tq=tq_eff, n=N, nqt=nqt,
        mxu_dtype=mxu_dtype, exp_dtype=exp_dtype, approx_recip=approx_recip)

    out = pl.pallas_call(
        kernel,
        out_shape=jax.ShapeDtypeStruct((B, C, N), jnp.float32),
        grid=(B, nqt),
        in_specs=[
            pl.BlockSpec(memory_space=pltpu.MemorySpace.SMEM),      # gamma (1,)
            pl.BlockSpec((1, C, N), lambda b, q: (b, 0, 0)),        # x, resident per batch
            pl.BlockSpec((3 * seg, C), lambda b, q: (0, 0)),        # fused f/g/h weights
            pl.BlockSpec((3 * seg, 1), lambda b, q: (0, 0)),        # fused f/g/h biases
            pl.BlockSpec((C, seg), lambda b, q: (0, 0)),            # wv (input-dim padded)
            pl.BlockSpec((C, 1), lambda b, q: (0, 0)),              # bv
        ],
        out_specs=pl.BlockSpec((1, C, N), lambda b, q: (b, 0, 0)),
        scratch_shapes=[
            pltpu.VMEM((nqt, seg, tq_eff), mxu_dtype),   # f tiles (query-padded)
            pltpu.VMEM((seg, N), mxu_dtype),             # g
            pltpu.VMEM((nqt, seg, tq_eff), mxu_dtype),   # h tiles (query-padded)
            pltpu.VMEM((seg, N), jnp.float32),           # x0 accumulator
        ],
        compiler_params=pltpu.CompilerParams(
            dimension_semantics=("parallel", "arbitrary"),
            vmem_limit_bytes=vmem_limit),
        interpret=interpret,
    )(gamma, x, wfgh, bfgh, wv_p, bv_p)

    return out.reshape(B, C, W, H)


# ---------------------------------------------------------------------------
# Params / reference
# ---------------------------------------------------------------------------
def init_params(key, C, gamma_value=0.0):
    """PyTorch Conv2d-style init (uniform +-1/sqrt(fan_in)); 1x1 conv weights as 2-D."""
    C8 = C // 8
    ks = jax.random.split(key, 8)

    def u(k, shape, fan_in):
        bound = 1.0 / math.sqrt(fan_in)
        return jax.random.uniform(k, shape, jnp.float32, -bound, bound)

    wf, bf = u(ks[0], (C8, C), C), u(ks[1], (C8,), C)
    wg, bg = u(ks[2], (C8, C), C), u(ks[3], (C8,), C)
    wh, bh = u(ks[4], (C8, C), C), u(ks[5], (C8,), C)
    wv, bv = u(ks[6], (C, C8), C8), u(ks[7], (C,), C8)
    gamma = jnp.array([gamma_value], dtype=jnp.float32)   # module inits gamma = 0
    return (wf, bf, wg, bg, wh, bh, wv, bv, gamma)


def ref_forward(x_nchw, params):
    """Pure-JAX reference mirroring the PyTorch NCHW formulation (f32, highest precision)."""
    wf, bf, wg, bg, wh, bh, wv, bv, gamma = params
    B, C, W, H = x_nchw.shape
    N = W * H
    xr = x_nchw.reshape(B, C, N)
    f = jnp.einsum('oc,bcn->bon', wf, xr, precision='highest') + bf[:, None]
    g = jnp.einsum('oc,bcn->bon', wg, xr, precision='highest') + bg[:, None]
    h = jnp.einsum('oc,bcn->bon', wh, xr, precision='highest') + bh[:, None]
    attn = jax.nn.softmax(
        jnp.einsum('bci,bcj->bij', f, g, precision='highest'), axis=-1)
    x0 = jnp.einsum('bci,bij->bcj', h, attn, precision='highest')
    v = jnp.einsum('oc,bcn->bon', wv, x0, precision='highest') + bv[:, None]
    return (v * gamma[0] + xr).reshape(B, C, W, H)


# ---------------------------------------------------------------------------
# Self-test
# ---------------------------------------------------------------------------
if __name__ == "__main__":
    key = jax.random.PRNGKey(0)
    kp, kx, kx2 = jax.random.split(key, 3)

    # Main test: B=2, C=32, 16x16 (N=256); default bf16 MXU path, two query tiles
    # (tq=128) exercise the cross-tile x0 accumulation.
    B, C, W, H = 2, 32, 16, 16
    x = jax.random.normal(kx, (B, C, W, H), jnp.float32)
    params = init_params(kp, C, gamma_value=0.7)
    params_g0 = params[:-1] + (jnp.zeros((1,), jnp.float32),)

    fwd_bf16 = jax.jit(functools.partial(attention_layer, tq=128))
    out = jax.block_until_ready(fwd_bf16(x, params))
    np.testing.assert_allclose(np.asarray(out), np.asarray(ref_forward(x, params)),
                               rtol=5e-2, atol=5e-2)

    # gamma = 0 (module default init): output must equal the input exactly.
    out_g0 = jax.block_until_ready(fwd_bf16(x, params_g0))
    np.testing.assert_allclose(np.asarray(out_g0), np.asarray(x), rtol=0.0, atol=1e-6)

    # f32 MXU path + zero-padded last query tile (N = 169 not divisible by 128).
    B2, C2, W2, H2 = 1, 16, 13, 13
    x2 = jax.random.normal(kx2, (B2, C2, W2, H2), jnp.float32)
    params2 = init_params(jax.random.PRNGKey(1), C2, gamma_value=0.5)
    fwd_f32 = jax.jit(functools.partial(attention_layer,
                                        mxu_dtype=jnp.float32, tq=128))
    out2 = jax.block_until_ready(fwd_f32(x2, params2))
    np.testing.assert_allclose(np.asarray(out2), np.asarray(ref_forward(x2, params2)),
                               rtol=1e-3, atol=1e-3)

    print("KERNEL_OK")
</pallas_src>

<mosaic_0001>
module attributes {stable_mosaic.version = 11 : i64} {
  func.func @_attention_kernel(%arg0: i32, %arg1: i32, %arg2: memref<1xf32, #tpu.memory_space<smem>>, %arg3: memref<1x32x256xf32, #tpu.memory_space<vmem>>, %arg4: memref<24x32xf32, #tpu.memory_space<vmem>>, %arg5: memref<24x1xf32, #tpu.memory_space<vmem>>, %arg6: memref<32x8xf32, #tpu.memory_space<vmem>>, %arg7: memref<32x1xf32, #tpu.memory_space<vmem>>, %arg8: memref<1x32x256xf32, #tpu.memory_space<vmem>>, %arg9: memref<2x8x128xbf16, #tpu.memory_space<vmem>>, %arg10: memref<8x256xbf16, #tpu.memory_space<vmem>>, %arg11: memref<2x8x128xbf16, #tpu.memory_space<vmem>>, %arg12: memref<8x256xf32, #tpu.memory_space<vmem>>) attributes {dimension_semantics = [#tpu.dimension_semantics<parallel>, #tpu.dimension_semantics<arbitrary>], iteration_bounds = array<i64: 2, 2>, scalar_prefetch = 0 : i64, scratch_operands = 4 : i64, tpu.core_type = #tpu.core_type<tc>, window_params = [{transform_indices = @transform_0, window_bounds = array<i64: 1>}, {transform_indices = @transform_1, window_bounds = array<i64: 1, 32, 256>}, {pipeline_mode = #tpu.pipeline_mode<synchronous>, transform_indices = @transform_2, window_bounds = array<i64: 24, 32>}, {pipeline_mode = #tpu.pipeline_mode<synchronous>, transform_indices = @transform_3, window_bounds = array<i64: 24, 1>}, {pipeline_mode = #tpu.pipeline_mode<synchronous>, transform_indices = @transform_4, window_bounds = array<i64: 32, 8>}, {pipeline_mode = #tpu.pipeline_mode<synchronous>, transform_indices = @transform_5, window_bounds = array<i64: 32, 1>}, {transform_indices = @transform_6, window_bounds = array<i64: 1, 32, 256>}]} {
    %c0_i32 = arith.constant 0 : i32
    %0 = arith.cmpi eq, %arg1, %c0_i32 : i32
    %1 = arith.extui %0 : i1 to i32
    %c0_i32_0 = arith.constant 0 : i32
    %2 = arith.cmpi ne, %1, %c0_i32_0 : i32
    scf.if %2 {
      %c0_14 = arith.constant 0 : index
      %c0_15 = arith.constant 0 : index
      %c0_16 = arith.constant 0 : index
      %32 = vector.load %arg3[%c0_14, %c0_15, %c0_16] : memref<1x32x256xf32, #tpu.memory_space<vmem>>, vector<1x32x256xf32>
      %33 = vector.shape_cast %32 : vector<1x32x256xf32> to vector<32x256xf32>
      %c0_17 = arith.constant 0 : index
      %c0_18 = arith.constant 0 : index
      %34 = vector.load %arg4[%c0_17, %c0_18] : memref<24x32xf32, #tpu.memory_space<vmem>>, vector<24x32xf32>
      %cst_19 = arith.constant dense<0.000000e+00> : vector<24x256xf32>
      %35 = tpu.matmul %34, %33, %cst_19 {dimension_numbers = #tpu.dot_dimension_numbers<[1], [0], [0], [1], [0, 0, 1, 1], [], []>} : vector<24x32xf32>, vector<32x256xf32>, vector<24x256xf32> -> vector<24x256xf32>
      %c0_20 = arith.constant 0 : index
      %c0_21 = arith.constant 0 : index
      %36 = vector.load %arg5[%c0_20, %c0_21] : memref<24x1xf32, #tpu.memory_space<vmem>>, vector<24x1xf32>
      %37 = vector.broadcast %36 : vector<24x1xf32> to vector<24x256xf32>
      %38 = arith.addf %35, %37 : vector<24x256xf32>
      %39 = vector.extract_strided_slice %38 {offsets = [0, 0], sizes = [8, 256], strides = [1, 1]} : vector<24x256xf32> to vector<8x256xf32>
      %40 = arith.truncf %39 : vector<8x256xf32> to vector<8x256xbf16>
      %41 = vector.extract_strided_slice %38 {offsets = [8, 0], sizes = [8, 256], strides = [1, 1]} : vector<24x256xf32> to vector<8x256xf32>
      %42 = arith.truncf %41 : vector<8x256xf32> to vector<8x256xbf16>
      %43 = vector.extract_strided_slice %38 {offsets = [16, 0], sizes = [8, 256], strides = [1, 1]} : vector<24x256xf32> to vector<8x256xf32>
      %44 = arith.truncf %43 : vector<8x256xf32> to vector<8x256xbf16>
      %c0_22 = arith.constant 0 : index
      %c0_23 = arith.constant 0 : index
      %45 = vector.load %arg10[%c0_22, %c0_23] : memref<8x256xbf16, #tpu.memory_space<vmem>>, vector<8x256xbf16>
      tpu.vector_store %arg10[%c0_22, %c0_23], %42 {strides = array<i32>} : memref<8x256xbf16, #tpu.memory_space<vmem>>, vector<8x256xbf16>,
      %46 = vector.extract_strided_slice %40 {offsets = [0, 0], sizes = [8, 128], strides = [1, 1]} : vector<8x256xbf16> to vector<8x128xbf16>
      %c0_24 = arith.constant 0 : index
      %c0_25 = arith.constant 0 : index
      %c0_26 = arith.constant 0 : index
      %47 = vector.load %arg9[%c0_24, %c0_25, %c0_26] : memref<2x8x128xbf16, #tpu.memory_space<vmem>>, vector<1x8x128xbf16>
      %48 = vector.shape_cast %47 : vector<1x8x128xbf16> to vector<8x128xbf16>
      %49 = vector.shape_cast %46 : vector<8x128xbf16> to vector<1x8x128xbf16>
      tpu.vector_store %arg9[%c0_24, %c0_25, %c0_26], %49 {strides = array<i32>} : memref<2x8x128xbf16, #tpu.memory_space<vmem>>, vector<1x8x128xbf16>,
      %50 = vector.extract_strided_slice %44 {offsets = [0, 0], sizes = [8, 128], strides = [1, 1]} : vector<8x256xbf16> to vector<8x128xbf16>
      %c0_27 = arith.constant 0 : index
      %c0_28 = arith.constant 0 : index
      %c0_29 = arith.constant 0 : index
      %51 = vector.load %arg11[%c0_27, %c0_28, %c0_29] : memref<2x8x128xbf16, #tpu.memory_space<vmem>>, vector<1x8x128xbf16>
      %52 = vector.shape_cast %51 : vector<1x8x128xbf16> to vector<8x128xbf16>
      %53 = vector.shape_cast %50 : vector<8x128xbf16> to vector<1x8x128xbf16>
      tpu.vector_store %arg11[%c0_27, %c0_28, %c0_29], %53 {strides = array<i32>} : memref<2x8x128xbf16, #tpu.memory_space<vmem>>, vector<1x8x128xbf16>,
      %54 = vector.extract_strided_slice %40 {offsets = [0, 128], sizes = [8, 128], strides = [1, 1]} : vector<8x256xbf16> to vector<8x128xbf16>
      %c1 = arith.constant 1 : index
      %c0_30 = arith.constant 0 : index
      %c0_31 = arith.constant 0 : index
      %55 = vector.load %arg9[%c1, %c0_30, %c0_31] : memref<2x8x128xbf16, #tpu.memory_space<vmem>>, vector<1x8x128xbf16>
      %56 = vector.shape_cast %55 : vector<1x8x128xbf16> to vector<8x128xbf16>
      %57 = vector.shape_cast %54 : vector<8x128xbf16> to vector<1x8x128xbf16>
      tpu.vector_store %arg9[%c1, %c0_30, %c0_31], %57 {strides = array<i32>} : memref<2x8x128xbf16, #tpu.memory_space<vmem>>, vector<1x8x128xbf16>,
      %58 = vector.extract_strided_slice %44 {offsets = [0, 128], sizes = [8, 128], strides = [1, 1]} : vector<8x256xbf16> to vector<8x128xbf16>
      %c1_32 = arith.constant 1 : index
      %c0_33 = arith.constant 0 : index
      %c0_34 = arith.constant 0 : index
      %59 = vector.load %arg11[%c1_32, %c0_33, %c0_34] : memref<2x8x128xbf16, #tpu.memory_space<vmem>>, vector<1x8x128xbf16>
      %60 = vector.shape_cast %59 : vector<1x8x128xbf16> to vector<8x128xbf16>
      %61 = vector.shape_cast %58 : vector<8x128xbf16> to vector<1x8x128xbf16>
      tpu.vector_store %arg11[%c1_32, %c0_33, %c0_34], %61 {strides = array<i32>} : memref<2x8x128xbf16, #tpu.memory_space<vmem>>, vector<1x8x128xbf16>,
      %cst_35 = arith.constant 0.000000e+00 : f32
      %62 = vector.broadcast %cst_35 : f32 to vector<8x256xf32>
      %c0_36 = arith.constant 0 : index
      %c0_37 = arith.constant 0 : index
      %63 = vector.load %arg12[%c0_36, %c0_37] : memref<8x256xf32, #tpu.memory_space<vmem>>, vector<8x256xf32>
      tpu.vector_store %arg12[%c0_36, %c0_37], %62 {strides = array<i32>} : memref<8x256xf32, #tpu.memory_space<vmem>>, vector<8x256xf32>,
    } else {
    }
    %3 = arith.index_cast %arg1 : i32 to index
    %c0 = arith.constant 0 : index
    %c0_1 = arith.constant 0 : index
    %4 = vector.load %arg9[%3, %c0, %c0_1] : memref<2x8x128xbf16, #tpu.memory_space<vmem>>, vector<1x8x128xbf16>
    %5 = vector.shape_cast %4 : vector<1x8x128xbf16> to vector<8x128xbf16>
    %6 = arith.index_cast %arg1 : i32 to index
    %c0_2 = arith.constant 0 : index
    %c0_3 = arith.constant 0 : index
    %7 = vector.load %arg11[%6, %c0_2, %c0_3] : memref<2x8x128xbf16, #tpu.memory_space<vmem>>, vector<1x8x128xbf16>
    %8 = vector.shape_cast %7 : vector<1x8x128xbf16> to vector<8x128xbf16>
    %c0_4 = arith.constant 0 : index
    %c0_5 = arith.constant 0 : index
    %9 = vector.load %arg10[%c0_4, %c0_5] : memref<8x256xbf16, #tpu.memory_space<vmem>>, vector<8x256xbf16>
    %cst = arith.constant dense<0.000000e+00> : vector<128x256xf32>
    %10 = tpu.matmul %5, %9, %cst {dimension_numbers = #tpu.dot_dimension_numbers<[0], [0], [1], [1], [0, 1, 1, 1], [], []>} : vector<8x128xbf16>, vector<8x256xbf16>, vector<128x256xf32> -> vector<128x256xf32>
    %cst_6 = arith.constant dense<0xFF800000> : vector<128xf32>
    %11 = vector.multi_reduction <maximumf>, %10, %cst_6 [1] : vector<128x256xf32> to vector<128xf32>
    %12 = vector.shape_cast %11 : vector<128xf32> to vector<128x1xf32>
    %13 = vector.broadcast %12 : vector<128x1xf32> to vector<128x256xf32>
    %14 = arith.subf %10, %13 : vector<128x256xf32>
    %15 = math.exp %14 : vector<128x256xf32>
    %cst_7 = arith.constant dense<0.000000e+00> : vector<128xf32>
    %16 = vector.multi_reduction <add>, %15, %cst_7 [1] : vector<128x256xf32> to vector<128xf32>
    %17 = vector.shape_cast %16 : vector<128xf32> to vector<128x1xf32>
    %18 = tpu.reciprocal %17 {approx = true} : vector<128x1xf32> -> vector<128x1xf32>
    %19 = tpu.transpose %18, [1, 0] : vector<128x1xf32> -> vector<1x128xf32>
    %20 = arith.extf %8 : vector<8x128xbf16> to vector<8x128xf32>
    %21 = vector.broadcast %19 : vector<1x128xf32> to vector<8x128xf32>
    %22 = arith.mulf %20, %21 : vector<8x128xf32>
    %23 = arith.truncf %22 : vector<8x128xf32> to vector<8x128xbf16>
    %c0_8 = arith.constant 0 : index
    %c0_9 = arith.constant 0 : index
    %24 = vector.load %arg12[%c0_8, %c0_9] : memref<8x256xf32, #tpu.memory_space<vmem>>, vector<8x256xf32>
    %25 = arith.truncf %15 : vector<128x256xf32> to vector<128x256xbf16>
    %cst_10 = arith.constant dense<0.000000e+00> : vector<8x256xf32>
    %26 = tpu.matmul %23, %25, %cst_10 {dimension_numbers = #tpu.dot_dimension_numbers<[1], [0], [0], [1], [0, 0, 1, 1], [], []>} : vector<8x128xbf16>, vector<128x256xbf16>, vector<8x256xf32> -> vector<8x256xf32>
    %27 = arith.addf %24, %26 : vector<8x256xf32>
    %c0_11 = arith.constant 0 : index
    %c0_12 = arith.constant 0 : index
    %28 = vector.load %arg12[%c0_11, %c0_12] : memref<8x256xf32, #tpu.memory_space<vmem>>, vector<8x256xf32>
    tpu.vector_store %arg12[%c0_11, %c0_12], %27 {strides = array<i32>} : memref<8x256xf32, #tpu.memory_space<vmem>>, vector<8x256xf32>,
    %c1_i32 = arith.constant 1 : i32
    %29 = arith.cmpi eq, %arg1, %c1_i32 : i32
    %30 = arith.extui %29 : i1 to i32
    %c0_i32_13 = arith.constant 0 : i32
    %31 = arith.cmpi ne, %30, %c0_i32_13 : i32
    scf.if %31 {
      %c0_14 = arith.constant 0 : index
      %c0_15 = arith.constant 0 : index
      %c0_16 = arith.constant 0 : index
      %32 = vector.load %arg3[%c0_14, %c0_15, %c0_16] : memref<1x32x256xf32, #tpu.memory_space<vmem>>, vector<1x32x256xf32>
      %33 = vector.shape_cast %32 : vector<1x32x256xf32> to vector<32x256xf32>
      %c0_17 = arith.constant 0 : index
      %c0_18 = arith.constant 0 : index
      %34 = vector.load %arg6[%c0_17, %c0_18] : memref<32x8xf32, #tpu.memory_space<vmem>>, vector<32x8xf32>
      %c0_19 = arith.constant 0 : index
      %c0_20 = arith.constant 0 : index
      %35 = vector.load %arg12[%c0_19, %c0_20] : memref<8x256xf32, #tpu.memory_space<vmem>>, vector<8x256xf32>
      %cst_21 = arith.constant dense<0.000000e+00> : vector<32x256xf32>
      %36 = tpu.matmul %34, %35, %cst_21 {dimension_numbers = #tpu.dot_dimension_numbers<[1], [0], [0], [1], [0, 0, 1, 1], [], []>} : vector<32x8xf32>, vector<8x256xf32>, vector<32x256xf32> -> vector<32x256xf32>
      %c0_22 = arith.constant 0 : index
      %c0_23 = arith.constant 0 : index
      %37 = vector.load %arg7[%c0_22, %c0_23] : memref<32x1xf32, #tpu.memory_space<vmem>>, vector<32x1xf32>
      %38 = vector.broadcast %37 : vector<32x1xf32> to vector<32x256xf32>
      %39 = arith.addf %36, %38 : vector<32x256xf32>
      %c0_24 = arith.constant 0 : index
      %40 = memref.load %arg2[%c0_24] : memref<1xf32, #tpu.memory_space<smem>>
      %41 = vector.broadcast %40 : f32 to vector<32x256xf32>
      %42 = arith.mulf %39, %41 : vector<32x256xf32>
      %43 = arith.addf %42, %33 : vector<32x256xf32>
      %c0_25 = arith.constant 0 : index
      %c0_26 = arith.constant 0 : index
      %c0_27 = arith.constant 0 : index
      %44 = vector.load %arg8[%c0_25, %c0_26, %c0_27] : memref<1x32x256xf32, #tpu.memory_space<vmem>>, vector<1x32x256xf32>
      %45 = vector.shape_cast %44 : vector<1x32x256xf32> to vector<32x256xf32>
      %46 = vector.shape_cast %43 : vector<32x256xf32> to vector<1x32x256xf32>
      tpu.vector_store %arg8[%c0_25, %c0_26, %c0_27], %46 {strides = array<i32>} : memref<1x32x256xf32, #tpu.memory_space<vmem>>, vector<1x32x256xf32>,
    } else {
    }
    return
  }
  func.func @transform_0(%arg0: i32, %arg1: i32) -> i32 {
    %c0_i32 = arith.constant 0 : i32
    %c0_i32_0 = arith.constant 0 : i32
    return %c0_i32 : i32
  }
  func.func @transform_1(%arg0: i32, %arg1: i32) -> (i32, i32, i32) {
    %c0_i32 = arith.constant 0 : i32
    %c0_i32_0 = arith.constant 0 : i32
    %c0_i32_1 = arith.constant 0 : i32
    return %arg0, %c0_i32, %c0_i32_0 : i32, i32, i32
  }
  func.func @transform_2(%arg0: i32, %arg1: i32) -> (i32, i32) {
    %c0_i32 = arith.constant 0 : i32
    %c0_i32_0 = arith.constant 0 : i32
    %c0_i32_1 = arith.constant 0 : i32
    return %c0_i32, %c0_i32_0 : i32, i32
  }
  func.func @transform_3(%arg0: i32, %arg1: i32) -> (i32, i32) {
    %c0_i32 = arith.constant 0 : i32
    %c0_i32_0 = arith.constant 0 : i32
    %c0_i32_1 = arith.constant 0 : i32
    return %c0_i32, %c0_i32_0 : i32, i32
  }
  func.func @transform_4(%arg0: i32, %arg1: i32) -> (i32, i32) {
    %c0_i32 = arith.constant 0 : i32
    %c0_i32_0 = arith.constant 0 : i32
    %c0_i32_1 = arith.constant 0 : i32
    return %c0_i32, %c0_i32_0 : i32, i32
  }
  func.func @transform_5(%arg0: i32, %arg1: i32) -> (i32, i32) {
    %c0_i32 = arith.constant 0 : i32
    %c0_i32_0 = arith.constant 0 : i32
    %c0_i32_1 = arith.constant 0 : i32
    return %c0_i32, %c0_i32_0 : i32, i32
  }
  func.func @transform_6(%arg0: i32, %arg1: i32) -> (i32, i32, i32) {
    %c0_i32 = arith.constant 0 : i32
    %c0_i32_0 = arith.constant 0 : i32
    %c0_i32_1 = arith.constant 0 : i32
    return %arg0, %c0_i32, %c0_i32_0 : i32, i32, i32
  }
}

</mosaic_0001>

<bundles_post_ra>
// kernel: attention_layer.1
= control target key start
LH: loop header
LB: loop body
LE: loop exit
PB: predicated region body
PF: predicated region fallthrough
CT: control target
= control target key end

     0   :  { %s1422_s23 = smov 0   ;;  %s1424_s24 = smov 0   ;;  %s1789_s0 = inlined_call_operand.<no memory space> [shape: f32[1], index: 0, kind: input, shape index: {}]   ;;  %s1790_s1 = inlined_call_operand.vmem [shape: f32[2,32,256], index: 1, kind: input, shape index: {}]   ;;  %s1791_s2 = inlined_call_operand.vmem [shape: f32[24,32], index: 2, kind: input, shape index: {}]   ;;  %s1792_s3 = inlined_call_operand.vmem [shape: f32[24,1], index: 3, kind: input, shape index: {}]   ;;  %s1793_s4 = inlined_call_operand.vmem [shape: f32[32,8], index: 4, kind: input, shape index: {}]   ;;  %s1794_s5 = inlined_call_operand.vmem [shape: f32[32,1], index: 5, kind: input, shape index: {}]   ;;  %s1795_s6 = inlined_call_operand.vmem [shape: f32[2,32,256], index: 6, kind: output, shape index: {}]  }
   0x1   :  { %11 = sst [smem:[#allocation6]] %s1789_s0  ;;  %s1426_s25 = smov 0  }
   0x2   :  { %s1428_s26 = smov 0   ;;  %s1430_s27 = smov 0  }
   0x3 LB: > { %s26_s0 = sadd.s32 1, %s1369_s25  ;;  %s29_s28 = sadd.s32 1, %s1373_s26  ;;  %s1377_s27 = sphi %s1430_s27, %s17_s27   ;;  %s1373_s26 = sphi %s1428_s26, %s1799_s26   ;;  %s1369_s25 = sphi %s1426_s25, %s1798_s25   ;;  %s1365_s24 = sphi %s1424_s24, %s1797_s24   ;;  %s1361_s23 = sphi %s1422_s23, %s1796_s23  }
   0x4   : > { %p27_p0 = scmp.ge.s32.totalorder %s26_s0, 2  ;;  %p1139_p1 = scmp.ge.s32.totalorder %s1377_s27, 1 }
   0x5   : > { %p225_p2 = scmp.lt.s32.totalorder %s1377_s27, 5 }
   0x6   : > { %s1801_s0 = smov (%p27_p0, %s26_s0), 0  ;;  %s1803_s28 = smov (!%p27_p0, %s29_s28), %s1373_s26 }
   0x7   : > { %p226_p3 = pnand %p1139_p1, %p225_p2  ;;  %p31_p4 = scmp.ge.s32.totalorder %s1803_s28, 2 }
   0x8   : > { %p255_p5 = scmp.lt.s32.totalorder (!%p226_p3), %s1365_s24, 1  ;;  %p1144_p6 = scmp.ne.s32.totalorder (!%p226_p3), %s1361_s23, 0 }
   0x9   : > { %s1805_s28 = smov (%p31_p4, %s1803_s28), 0  ;;  %229 = sbr.rel (%p226_p3) target bundleno = 1388 (0x56c), region = 44 }
   0xe   : > { %s1807_s24 = smov (!%p255_p5, %s1365_s24), 1  ;;  %269 = sbr.rel (%p1144_p6) target bundleno = 233 (0xe9), region = 48 }
   0xf   : > { %s1169_s29 = sshll.u32 %s1807_s24, 6 }
  0x10   : > { %s1457_s8 = scalar_lea.vmem %s1790_s1, %s1169_s29  ;;  %s1462_s11 = scalar_lea.vmem %s1795_s6, %s1169_s29 }
  0x13   : > { %v277_v0 = vld [vmem:[%s1457_s8 + $0x38] sm:$0xff]  ;;  %v276_v1 = vld [vmem:[%s1457_s8 + $0x30] sm:$0xff]  ;;  %v275_v2 = vld [vmem:[%s1457_s8 + $0x28] sm:$0xff]  ;;  %v1379_v4 = vmov 0.0   ;;  %vm299_vm0 = vcmask 261120   ;;  %v1380_v14 = vmov 0  }
  0x14   : > { %333 = vmatprep.subr.mxu0 %v277_v0  ;;  %1182 = vmatprep.subr.mxu1 %v277_v0  ;;  %v274_v3 = vld [vmem:[%s1457_s8 + $0x20] sm:$0xff]  ;;  %411 = vst [vmem:[#allocation5] sm:$0xff] %v1379_v4  ;;  %412 = vst [vmem:[#allocation5 + $0x8] sm:$0xff] %v1379_v4  ;;  %v273_v5 = vld [vmem:[%s1457_s8 + $0x18] sm:$0xff] }
  0x15   : > { %334 = vmatpush1.msra.mxu0 %v276_v1  ;;  %1186 = vmatpush1.msra.mxu1 %v276_v1  ;;  %v272_v6 = vld [vmem:[%s1457_s8 + $0x10] sm:$0xff]  ;;  %v271_v7 = vld [vmem:[%s1457_s8 + $0x8] sm:$0xff]  ;;  %v270_v8 = vld [vmem:[%s1457_s8] sm:$0xff] }
  0x16   : > { %335 = vmatprep.subr.mxu0 %v275_v2  ;;  %1183 = vmatprep.subr.mxu1 %v275_v2  ;;  %v278_v9 = vld [vmem:[%s1791_s2] sm:$0xff]  ;;  %v279_v10 = vld [vmem:[%s1791_s2 + $0x8] sm:$0xff]  ;;  %v283_v12 = vld [vmem:[%s1792_s3 + $0x10] sm:$0xff] }
  0x17   : > { %336 = vmatpush1.msra.mxu0 %v274_v3  ;;  %1187 = vmatpush1.msra.mxu1 %v274_v3  ;;  %v281_v11 = vld [vmem:[%s1792_s3] sm:$0xff]  ;;  %v280_v13 = vld [vmem:[%s1791_s2 + $0x10] sm:$0xff]  ;;  %v282_v15 = vld [vmem:[%s1792_s3 + $0x8] sm:$0xff] }
  0x18   : > { %337 = vmatprep.subr.mxu0 %v273_v5  ;;  %1184 = vmatprep.subr.mxu1 %v273_v5 }
  0x19   : > { %338 = vmatpush1.msra.mxu0 %v272_v6  ;;  %1188 = vmatpush1.msra.mxu1 %v272_v6 }
  0x1a   : > { %339 = vmatprep.subr.mxu0 %v271_v7  ;;  %1185 = vmatprep.subr.mxu1 %v271_v7 }
  0x1b   : > { %340 = vmatpush1.msra.mxu0 %v270_v8  ;;  %1189 = vmatpush1.msra.mxu1 %v270_v8 }
  0x1c   : > { %373 = vmatprep.mubr.f32.mxu0 %v1379_v4  ;;  %379 = vmatprep.mubr.f32.mxu1 %v1379_v4 }
  0x1d   : > { %1145 = vmatmul.mubr.msk.f32.vlgmr.msra.gmra.mxu0 %vm299_vm0, %v278_v9  ;;  %1146 = vmatmul.mubr.msk.f32.vlgmr.msra.gmra.mxu1 %vm299_vm0, %v279_v10 }
  0x1e   : > { %385 = vmatprep.mubr.f32.mxu1 %v1379_v4  ;;  %1237 = vset.pattern.permute.xlu0 %v1380_v14 }
  0x1f   : > { %286 = vperm.xlu0 %1237, %v281_v11   ;;  %1238 = vset.pattern.permute.xlu1 %v1380_v14 }
  0x20   : > { %296 = vperm.xlu1 %1238, %v283_v12  }
  0x21   : > { %1147 = vmatmul.mubr.msk.f32.gmra.mxu1 %vm299_vm0, %v280_v13 }
  0x23   : > { %291 = vperm.xlu0 %1237, %v282_v15  }
  0x9a   : > { %v287_v16 = vpop.permute.xlu0 %286 }
  0x9b   : > { %v297_v26 = vpop.permute.xlu1 %296 }
  0x9e   : > { %v292_v17 = vpop.permute.xlu0 %291 }
  0xdd   : > { %v375_v18 = vpop.f32.mrf.mxu0  ;;  %v381_v19 = vpop.f32.mrf.mxu1 }
  0xde   : > { %v376_v20 = vadd.f32 %v375_v18, %v287_v16  ;;  %v382_v23 = vadd.f32 %v381_v19, %v292_v17 }
  0xdf   : > { %v377_v21 = vpop.f32.mrf.mxu0  ;;  %v383_v22 = vpop.f32.mrf.mxu1 }
  0xe0   : > { %v378_v24 = vadd.f32 %v377_v21, %v287_v16  ;;  %v384_v25 = vadd.f32 %v383_v22, %v292_v17 }
  0xe1   : > { %v387_v27 = vpop.f32.mrf.mxu1 }
  0xe2   : > { %v1175_v28 = vpack.c.bf16 %v378_v24, %v376_v20  ;;  %v1171_v29 = vpack.c.bf16 %v384_v25, %v382_v23  ;;  %v388_v31 = vadd.f32 %v387_v27, %v297_v26 }
  0xe3   : > { %v389_v30 = vpop.f32.mrf.mxu1 }
  0xe4   : > { %1176 = vst [vmem:[#allocation2] sm:$0xff] %v1175_v28   ;;  %404 = vst [vmem:[#allocation3] sm:$0xff] %v1171_v29  ;;  %v390_v32 = vadd.f32 %v389_v30, %v297_v26 }
  0xe6   : > { %v1180_v33 = vpack.c.bf16 %v390_v32, %v388_v31 }
  0xe8   : > { %1181 = vst [vmem:[#allocation4] sm:$0xff] %v1180_v33  }
  0xe9 PF: > { %s1149_s29 = sshll.u32 %s1361_s23, 2  ;;  %vm466_vm1 = vcmask 1043456   ;;  %v1381_v37 = vmov 0   ;;  %vm441_vm2 = vcmask 64512   ;;  %p1162_p7 = scmp.ne.s32.totalorder %s1361_s23, 1 }
  0xea   : > { %505 = vmatprep.mubr.bf16.mxu0 %v1381_v37  ;;  %883 = vmatprep.mubr.bf16.mxu1 %v1381_v37  ;;  %s414_s30 = scalar_lea.vmem [#allocation2], %s1149_s29  ;;  %s417_s7 = scalar_lea.vmem [#allocation4], %s1149_s29 }
  0xeb   : > { %v419_v34 = vld [vmem:[#allocation3] sm:$0xff]  ;;  %v415_v38 = vld [vmem:[%s414_s30] sm:$0xf]  ;;  %s1039_s30 = sld [smem:[#allocation6]] (!%p1162_p7) }
  0xec   : > { %v1152_v35 = vcombine.high %v419_v34, %v419_v34  ;;  %v1151_v36 = vcombine.low %v419_v34, %v419_v34  ;;  %420 = vxpose.xlu0.c.b16.start.end [1/1] (short) %v415_v38, 128 }
  0xee   : > { %1153 = vmatprep.subr.msk.bf16.mxu0 %vm466_vm1, %v1152_v35  ;;  %v468_v39 = vsel %vm466_vm1, %v1151_v36, 0 }
  0xef   : > { %488 = vmatpush1.bf16.msra.mxu0 %v468_v39 }
 0x14e   : > { %v428_v40 = vpop.trf.xlu0 }
 0x14f   : > { %1154 = vmatmul.mubr.msk.bf16.vlgmr.msra.gmra.mxu0 %vm441_vm2, %v428_v40 }
 0x150   : > { %515 = vmatprep.mubr.bf16.mxu0 %v1381_v37 }
 0x152   : > { %v429_v41 = vpop.trf.xlu0 }
 0x156   : > { %v430_v42 = vpop.trf.xlu0 }
 0x157   : > { %1155 = vmatmul.mubr.msk.bf16.gmra.mxu0 %vm441_vm2, %v429_v41 }
 0x158   : > { %525 = vmatprep.mubr.bf16.mxu0 %v1381_v37 }
 0x15a   : > { %v431_v43 = vpop.trf.xlu0 }
 0x15e   : > { %v432_v44 = vpop.trf.xlu0 }
 0x15f   : > { %1156 = vmatmul.mubr.msk.bf16.gmra.mxu0 %vm441_vm2, %v430_v42 }
 0x160   : > { %535 = vmatprep.mubr.bf16.mxu0 %v1381_v37 }
 0x162   : > { %v433_v45 = vpop.trf.xlu0 }
 0x166   : > { %v434_v46 = vpop.trf.xlu0 }
 0x167   : > { %1157 = vmatmul.mubr.msk.bf16.gmra.mxu0 %vm441_vm2, %v431_v43 }
 0x168   : > { %545 = vmatprep.mubr.bf16.mxu0 %v1381_v37 }
 0x16a   : > { %v435_v47 = vpop.trf.xlu0 }
 0x16f   : > { %1158 = vmatmul.mubr.msk.bf16.gmra.mxu0 %vm441_vm2, %v432_v44 }
 0x170   : > { %555 = vmatprep.mubr.bf16.mxu0 %v1381_v37 }
 0x177   : > { %1159 = vmatmul.mubr.msk.bf16.gmra.mxu0 %vm441_vm2, %v433_v45 }
 0x178   : > { %565 = vmatprep.mubr.bf16.mxu0 %v1381_v37 }
 0x17f   : > { %1160 = vmatmul.mubr.msk.bf16.gmra.mxu0 %vm441_vm2, %v434_v46 }
 0x180   : > { %575 = vmatprep.mubr.bf16.mxu0 %v1381_v37 }
 0x187   : > { %1161 = vmatmul.mubr.msk.bf16.gmra.mxu0 %vm441_vm2, %v435_v47 }
 0x20f   : > { %v1505_v48 = vpop.f32.mrf.mxu0 }
 0x211   : > { %v1507_v49 = vpop.f32.mrf.mxu0 }
 0x212   : > { %v586_v50 = vmax.f32 %v1505_v48, %v1507_v49 }
 0x213   : > { %v1511_v51 = vpop.f32.mrf.mxu0 }
 0x214   : > { %587 = vmax.xlane.f32.xlu0 %v586_v50 }
 0x215   : > { %v1513_v52 = vpop.f32.mrf.mxu0 }
 0x216   : > { %v589_v53 = vmax.f32 %v1511_v51, %v1513_v52 }
 0x217   : > { %v1517_v54 = vpop.f32.mrf.mxu0 }
 0x218   : > { %590 = vmax.xlane.f32.xlu1 %v589_v53 }
 0x219   : > { %v1519_v55 = vpop.f32.mrf.mxu0 }
 0x21a   : > { %v592_v56 = vmax.f32 %v1517_v54, %v1519_v55 }
 0x21b   : > { %v1523_v57 = vpop.f32.mrf.mxu0 }
 0x21c   : > { %593 = vmax.xlane.f32.xlu1 %v592_v56 }
 0x21d   : > { %v1525_v58 = vpop.f32.mrf.mxu0 }
 0x21e   : > { %v595_v59 = vmax.f32 %v1523_v57, %v1525_v58 }
 0x21f   : > { %v1529_v60 = vpop.f32.mrf.mxu0 }
 0x220   : > { %596 = vmax.xlane.f32.xlu1 %v595_v59 }
 0x221   : > { %v1531_v61 = vpop.f32.mrf.mxu0 }
 0x222   : > { %v598_v62 = vmax.f32 %v1529_v60, %v1531_v61 }
 0x223   : > { %v1535_v63 = vpop.f32.mrf.mxu0 }
 0x224   : > { %599 = vmax.xlane.f32.xlu1 %v598_v62 }
 0x225   : > { %v1537_v0 = vpop.f32.mrf.mxu0 }
 0x226   : > { %v601_v1 = vmax.f32 %v1535_v63, %v1537_v0 }
 0x227   : > { %v1541_v2 = vpop.f32.mrf.mxu0 }
 0x228   : > { %602 = vmax.xlane.f32.xlu1 %v601_v1 }
 0x229   : > { %v1543_v3 = vpop.f32.mrf.mxu0 }
 0x22a   : > { %v604_v4 = vmax.f32 %v1541_v2, %v1543_v3 }
 0x22b   : > { %v1547_v5 = vpop.f32.mrf.mxu0 }
 0x22c   : > { %605 = vmax.xlane.f32.xlu1 %v604_v4 }
 0x22d   : > { %v1549_v6 = vpop.f32.mrf.mxu0 }
 0x22e   : > { %v607_v7 = vmax.f32 %v1547_v5, %v1549_v6 }
 0x22f   : > { %v1553_v8 = vpop.f32.mrf.mxu0 }
 0x230   : > { %608 = vmax.xlane.f32.xlu1 %v607_v7 }
 0x231   : > { %v1555_v9 = vpop.f32.mrf.mxu0 }
 0x232   : > { %v610_v10 = vmax.f32 %v1553_v8, %v1555_v9 }
 0x233   : > { %v1559_v11 = vpop.f32.mrf.mxu0 }
 0x234   : > { %611 = vmax.xlane.f32.xlu1 %v610_v10 }
 0x235   : > { %v1561_v12 = vpop.f32.mrf.mxu0 }
 0x236   : > { %v613_v13 = vmax.f32 %v1559_v11, %v1561_v12 }
 0x237   : > { %v1565_v14 = vpop.f32.mrf.mxu0 }
 0x238   : > { %614 = vmax.xlane.f32.xlu1 %v613_v13 }
 0x239   : > { %v1567_v15 = vpop.f32.mrf.mxu0 }
 0x23a   : > { %v616_v16 = vmax.f32 %v1565_v14, %v1567_v15 }
 0x23b   : > { %v1571_v17 = vpop.f32.mrf.mxu0 }
 0x23c   : > { %617 = vmax.xlane.f32.xlu1 %v616_v16 }
 0x23d   : > { %v1573_v18 = vpop.f32.mrf.mxu0 }
 0x23e   : > { %v619_v19 = vmax.f32 %v1571_v17, %v1573_v18 }
 0x23f   : > { %v1577_v20 = vpop.f32.mrf.mxu0 }
 0x240   : > { %620 = vmax.xlane.f32.xlu1 %v619_v19 }
 0x241   : > { %v1579_v21 = vpop.f32.mrf.mxu0 }
 0x242   : > { %v622_v22 = vmax.f32 %v1577_v20, %v1579_v21 }
 0x243   : > { %v1583_v23 = vpop.f32.mrf.mxu0 }
 0x244   : > { %623 = vmax.xlane.f32.xlu1 %v622_v22 }
 0x245   : > { %v1585_v24 = vpop.f32.mrf.mxu0 }
 0x246   : > { %v625_v25 = vmax.f32 %v1583_v23, %v1585_v24 }
 0x247   : > { %v1589_v26 = vpop.f32.mrf.mxu0 }
 0x248   : > { %626 = vmax.xlane.f32.xlu0 %v625_v25 }
 0x249   : > { %v1591_v27 = vpop.f32.mrf.mxu0 }
 0x24a   : > { %v628_v28 = vmax.f32 %v1589_v26, %v1591_v27 }
 0x24b   : > { %v1595_v29 = vpop.f32.mrf.mxu0 }
 0x24c   : > { %629 = vmax.xlane.f32.xlu1 %v628_v28 }
 0x24d   : > { %v1597_v30 = vpop.f32.mrf.mxu0 }
 0x24e   : > { %v631_v31 = vmax.f32 %v1595_v29, %v1597_v30 }
 0x250   : > { %632 = vmax.xlane.f32.xlu0 %v631_v31 }
 0x29d   : > { %v588_v32 = vpop.xlane.xlu0 %587 }
 0x29e   : > { %v634_v33 = vsub.f32 %v1505_v48, %v588_v32  ;;  %v635_v34 = vsub.f32 %v1507_v49, %v588_v32 }
 0x2a0   : > { %v666_v35 = vmul.f32 1.442695, %v634_v33  ;;  %v668_v36 = vmul.f32 1.442695, %v635_v34 }
 0x2a1   : > { %v591_v37 = vpop.xlane.xlu1 %590 }
 0x2a2   : > { %1241 = vpow2.f32 %v666_v35  ;;  %v636_v38 = vsub.f32 %v1511_v51, %v591_v37  ;;  %v637_v39 = vsub.f32 %v1513_v52, %v591_v37 }
 0x2a3   : > { %1243 = vpow2.f32 %v668_v36 }
 0x2a4   : > { %v670_v40 = vmul.f32 1.442695, %v636_v38  ;;  %v672_v41 = vmul.f32 1.442695, %v637_v39 }
 0x2a5   : > { %v594_v42 = vpop.xlane.xlu1 %593 }
 0x2a6   : > { %1245 = vpow2.f32 %v670_v40  ;;  %v638_v43 = vsub.f32 %v1517_v54, %v594_v42  ;;  %v639_v44 = vsub.f32 %v1519_v55, %v594_v42 }
 0x2a7   : > { %1247 = vpow2.f32 %v672_v41 }
 0x2a8   : > { %v674_v45 = vmul.f32 1.442695, %v638_v43  ;;  %v676_v46 = vmul.f32 1.442695, %v639_v44 }
 0x2a9   : > { %v597_v47 = vpop.xlane.xlu1 %596 }
 0x2aa   : > { %1249 = vpow2.f32 %v674_v45  ;;  %v640_v48 = vsub.f32 %v1523_v57, %v597_v47  ;;  %v641_v49 = vsub.f32 %v1525_v58, %v597_v47 }
 0x2ab   : > { %1251 = vpow2.f32 %v676_v46 }
 0x2ac   : > { %v678_v50 = vmul.f32 1.442695, %v640_v48  ;;  %v680_v51 = vmul.f32 1.442695, %v641_v49 }
 0x2ad   : > { %v600_v52 = vpop.xlane.xlu1 %599 }
 0x2ae   : > { %1253 = vpow2.f32 %v678_v50  ;;  %v642_v53 = vsub.f32 %v1529_v60, %v600_v52  ;;  %v643_v54 = vsub.f32 %v1531_v61, %v600_v52 }
 0x2af   : > { %v1611_v56 = vpop.eup %1241  ;;  %1255 = vpow2.f32 %v680_v51 }
 0x2b0   : > { %v1613_v55 = vpop.eup %1243  ;;  %v682_v59 = vmul.f32 1.442695, %v642_v53  ;;  %v684_v62 = vmul.f32 1.442695, %v643_v54 }
 0x2b1   : > { %v603_v1 = vpop.xlane.xlu1 %602  ;;  %v730_v57 = vadd.f32 %v1613_v55, %v1611_v56 }
 0x2b2   : > { %1257 = vpow2.f32 %v682_v59  ;;  %v644_v58 = vsub.f32 %v1535_v63, %v603_v1  ;;  %v645_v4 = vsub.f32 %v1537_v0, %v603_v1 }
 0x2b3   : > { %v1619_v7 = vpop.eup %1245  ;;  %1259 = vpow2.f32 %v684_v62  ;;  %731 = vadd.xlane.f32.xlu1 %v730_v57 }
 0x2b4   : > { %v1621_v60 = vpop.eup %1247  ;;  %v686_v61 = vmul.f32 1.442695, %v644_v58  ;;  %v688_v10 = vmul.f32 1.442695, %v645_v4  ;;  %v835_v13 = vpack.c.bf16 %v1619_v7, %v1611_v56 }
 0x2b5   : > { %v606_v16 = vpop.xlane.xlu1 %605  ;;  %v733_v19 = vadd.f32 %v1621_v60, %v1619_v7  ;;  %v836_v63 = vpack.c.bf16 %v1621_v60, %v1613_v55 }
 0x2b6   : > { %1261 = vpow2.f32 %v686_v61  ;;  %v646_v0 = vsub.f32 %v1541_v2, %v606_v16  ;;  %v647_v22 = vsub.f32 %v1543_v3, %v606_v16 }
 0x2b7   : > { %v1631_v25 = vpop.eup %1249  ;;  %1263 = vpow2.f32 %v688_v10  ;;  %734 = vadd.xlane.f32.xlu0 %v733_v19 }
 0x2b8   : > { %v1633_v28 = vpop.eup %1251  ;;  %v690_v31 = vmul.f32 1.442695, %v646_v0  ;;  %v692_v32 = vmul.f32 1.442695, %v647_v22 }
 0x2b9   : > { %v609_v33 = vpop.xlane.xlu1 %608  ;;  %v736_v34 = vadd.f32 %v1633_v28, %v1631_v25 }
 0x2ba   : > { %1265 = vpow2.f32 %v690_v31  ;;  %v648_v35 = vsub.f32 %v1547_v5, %v609_v33  ;;  %v649_v36 = vsub.f32 %v1549_v6, %v609_v33 }
 0x2bb   : > { %v1639_v2 = vpop.eup %1253  ;;  %1267 = vpow2.f32 %v692_v32  ;;  %737 = vadd.xlane.f32.xlu1 %v736_v34 }
 0x2bc   : > { %v1641_v3 = vpop.eup %1255  ;;  %v694_v37 = vmul.f32 1.442695, %v648_v35  ;;  %v696_v38 = vmul.f32 1.442695, %v649_v36  ;;  %v837_v39 = vpack.c.bf16 %v1639_v2, %v1631_v25 }
 0x2bd   : > { %v612_v40 = vpop.xlane.xlu1 %611  ;;  %v739_v41 = vadd.f32 %v1641_v3, %v1639_v2  ;;  %v838_v5 = vpack.c.bf16 %v1641_v3, %v1633_v28 }
 0x2be   : > { %1269 = vpow2.f32 %v694_v37  ;;  %v650_v6 = vsub.f32 %v1553_v8, %v612_v40  ;;  %v651_v42 = vsub.f32 %v1555_v9, %v612_v40 }
 0x2bf   : > { %v1651_v43 = vpop.eup %1257  ;;  %1271 = vpow2.f32 %v696_v38  ;;  %740 = vadd.xlane.f32.xlu0 %v739_v41 }
 0x2c0   : > { %v1653_v44 = vpop.eup %1259  ;;  %v698_v45 = vmul.f32 1.442695, %v650_v6  ;;  %v700_v46 = vmul.f32 1.442695, %v651_v42 }
 0x2c1   : > { %v615_v47 = vpop.xlane.xlu1 %614  ;;  %v742_v48 = vadd.f32 %v1653_v44, %v1651_v43 }
 0x2c2   : > { %1273 = vpow2.f32 %v698_v45  ;;  %v652_v49 = vsub.f32 %v1559_v11, %v615_v47  ;;  %v653_v50 = vsub.f32 %v1561_v12, %v615_v47 }
 0x2c3   : > { %v1659_v8 = vpop.eup %1261  ;;  %1275 = vpow2.f32 %v700_v46  ;;  %743 = vadd.xlane.f32.xlu1 %v742_v48 }
 0x2c4   : > { %v1661_v9 = vpop.eup %1263  ;;  %v702_v51 = vmul.f32 1.442695, %v652_v49  ;;  %v704_v52 = vmul.f32 1.442695, %v653_v50  ;;  %v839_v53 = vpack.c.bf16 %v1659_v8, %v1651_v43 }
 0x2c5   : > { %v618_v54 = vpop.xlane.xlu1 %617  ;;  %v745_v59 = vadd.f32 %v1661_v9, %v1659_v8  ;;  %v840_v11 = vpack.c.bf16 %v1661_v9, %v1653_v44 }
 0x2c6   : > { %1277 = vpow2.f32 %v702_v51  ;;  %v654_v12 = vsub.f32 %v1565_v14, %v618_v54  ;;  %v655_v62 = vsub.f32 %v1567_v15, %v618_v54 }
 0x2c7   : > { %v1671_v1 = vpop.eup %1265  ;;  %1279 = vpow2.f32 %v704_v52  ;;  %746 = vadd.xlane.f32.xlu0 %v745_v59 }
 0x2c8   : > { %v1673_v57 = vpop.eup %1267  ;;  %v706_v58 = vmul.f32 1.442695, %v654_v12  ;;  %v708_v4 = vmul.f32 1.442695, %v655_v62 }
 0x2c9   : > { %v621_v61 = vpop.xlane.xlu1 %620  ;;  %v748_v10 = vadd.f32 %v1673_v57, %v1671_v1 }
 0x2ca   : > { %1281 = vpow2.f32 %v706_v58  ;;  %v656_v16 = vsub.f32 %v1571_v17, %v621_v61  ;;  %v657_v19 = vsub.f32 %v1573_v18, %v621_v61 }
 0x2cb   : > { %v1679_v14 = vpop.eup %1269  ;;  %1283 = vpow2.f32 %v708_v4  ;;  %749 = vadd.xlane.f32.xlu1 %v748_v10 }
 0x2cc   : > { %v1681_v15 = vpop.eup %1271  ;;  %v710_v0 = vmul.f32 1.442695, %v656_v16  ;;  %v712_v22 = vmul.f32 1.442695, %v657_v19 }
 0x2cd   : > { %v624_v31 = vpop.xlane.xlu1 %623  ;;  %v751_v32 = vadd.f32 %v1681_v15, %v1679_v14 }
 0x2ce   : > { %1285 = vpow2.f32 %v710_v0  ;;  %v658_v33 = vsub.f32 %v1577_v20, %v624_v31  ;;  %v659_v34 = vsub.f32 %v1579_v21, %v624_v31 }
 0x2cf   : > { %v1687_v17 = vpop.eup %1273  ;;  %1287 = vpow2.f32 %v712_v22  ;;  %752 = vadd.xlane.f32.xlu0 %v751_v32 }
 0x2d0   : > { %v1689_v18 = vpop.eup %1275  ;;  %v714_v35 = vmul.f32 1.442695, %v658_v33  ;;  %v716_v36 = vmul.f32 1.442695, %v659_v34 }
 0x2d1   : > { %v627_v37 = vpop.xlane.xlu0 %626  ;;  %v754_v38 = vadd.f32 %v1689_v18, %v1687_v17 }
 0x2d2   : > { %1289 = vpow2.f32 %v714_v35  ;;  %v660_v40 = vsub.f32 %v1583_v23, %v627_v37  ;;  %v661_v41 = vsub.f32 %v1585_v24, %v627_v37 }
 0x2d3   : > { %v1695_v20 = vpop.eup %1277  ;;  %1291 = vpow2.f32 %v716_v36  ;;  %755 = vadd.xlane.f32.xlu1 %v754_v38 }
 0x2d4   : > { %v1280_v21 = vpop.eup %1279  ;;  %v718_v6 = vmul.f32 1.442695, %v660_v40  ;;  %v720_v42 = vmul.f32 1.442695, %v661_v41 }
 0x2d5   : > { %v630_v45 = vpop.xlane.xlu1 %629  ;;  %v757_v46 = vadd.f32 %v1280_v21, %v1695_v20  ;;  %v844_v41 = vpack.c.bf16 %v1280_v21, %v1689_v18 }
 0x2d6   : > { %1293 = vpow2.f32 %v718_v6  ;;  %v662_v47 = vsub.f32 %v1589_v26, %v630_v45  ;;  %v663_v48 = vsub.f32 %v1591_v27, %v630_v45  ;;  %v843_v6 = vpack.c.bf16 %v1695_v20, %v1687_v17 }
 0x2d7   : > { %v1282_v49 = vpop.eup %1281  ;;  %1295 = vpow2.f32 %v720_v42  ;;  %758 = vadd.xlane.f32.xlu0 %v757_v46  ;;  %v842_v42 = vpack.c.bf16 %v1681_v15, %v1673_v57  ;;  %v841_v45 = vpack.c.bf16 %v1679_v14, %v1671_v1 }
 0x2d8   : > { %v1284_v23 = vpop.eup %1283  ;;  %v722_v24 = vmul.f32 1.442695, %v662_v47  ;;  %v724_v50 = vmul.f32 1.442695, %v663_v48 }
 0x2d9   : > { %v633_v51 = vpop.xlane.xlu0 %632  ;;  %v760_v52 = vadd.f32 %v1284_v23, %v1282_v49 }
 0x2da   : > { %1297 = vpow2.f32 %v722_v24  ;;  %v664_v54 = vsub.f32 %v1595_v29, %v633_v51  ;;  %v665_v59 = vsub.f32 %v1597_v30, %v633_v51 }
 0x2db   : > { %v1286_v12 = vpop.eup %1285  ;;  %1299 = vpow2.f32 %v724_v50  ;;  %761 = vadd.xlane.f32.xlu1 %v760_v52  ;;  %v827_v50 = vlaneseq  ;;  %v418_v52 = vld [vmem:[%s417_s7] sm:$0xf] }
 0x2dc   : > { %v1288_v62 = vpop.eup %1287  ;;  %v726_v26 = vmul.f32 1.442695, %v664_v54  ;;  %v728_v58 = vmul.f32 1.442695, %v665_v59  ;;  %v845_v40 = vpack.c.bf16 %v1286_v12, %v1282_v49  ;;  %v826_v59 = vunpack.c.l.bf16 %v418_v52 }
 0x2dd   : > { %v763_v27 = vadd.f32 %v1288_v62, %v1286_v12  ;;  %v846_v38 = vpack.c.bf16 %v1288_v62, %v1284_v23  ;;  %v828_v51 = vshrl.u32 %v827_v50, 7 }
 0x2de   : > { %1301 = vpow2.f32 %v726_v26 }
 0x2df   : > { %v1290_v4 = vpop.eup %1289  ;;  %1303 = vpow2.f32 %v728_v58  ;;  %764 = vadd.xlane.f32.xlu0 %v763_v27  ;;  %v829_v54 = vsub.s32 0, %v828_v51  ;;  %v833_v27 = vld [vmem:[#allocation5] sm:$0xff] }
 0x2e0   : > { %v1292_v61 = vpop.eup %1291 }
 0x2e1   : > { %v766_v10 = vadd.f32 %v1292_v61, %v1290_v4 }
 0x2e3   : > { %v1294_v16 = vpop.eup %1293  ;;  %767 = vadd.xlane.f32.xlu1 %v766_v10 }
 0x2e4   : > { %v1296_v19 = vpop.eup %1295  ;;  %v847_v37 = vpack.c.bf16 %v1294_v16, %v1290_v4 }
 0x2e5   : > { %v769_v0 = vadd.f32 %v1296_v19, %v1294_v16  ;;  %v848_v36 = vpack.c.bf16 %v1296_v19, %v1292_v61  ;;  %v834_v61 = vld [vmem:[#allocation5 + $0x8] sm:$0xff] }
 0x2e7   : > { %v1298_v29 = vpop.eup %1297  ;;  %770 = vadd.xlane.f32.xlu0 %v769_v0 }
 0x2e8   : > { %v1300_v30 = vpop.eup %1299 }
 0x2e9   : > { %v772_v22 = vadd.f32 %v1300_v30, %v1298_v29 }
 0x2eb   : > { %v1302_v31 = vpop.eup %1301  ;;  %773 = vadd.xlane.f32.xlu1 %v772_v22 }
 0x2ec   : > { %v1304_v32 = vpop.eup %1303  ;;  %v849_v33 = vpack.c.bf16 %v1302_v31, %v1298_v29 }
 0x2ed   : > { %v850_v34 = vpack.c.bf16 %v1304_v32, %v1300_v30  ;;  %v775_v35 = vadd.f32 %v1304_v32, %v1302_v31 }
 0x2ef   : > { %851 = vmatprep.subr.bf16.mxu1 %v850_v34  ;;  %776 = vadd.xlane.f32.xlu0 %v775_v35 }
 0x2f0   : > { %852 = vmatpush1.bf16.msra.mxu1 %v849_v33 }
 0x2f1   : > { %853 = vmatprep.subr.bf16.mxu1 %v848_v36 }
 0x2f4   : > { %854 = vmatpush1.bf16.msra.mxu1 %v847_v37 }
 0x2f5   : > { %855 = vmatprep.subr.bf16.mxu1 %v846_v38 }
 0x2f8   : > { %856 = vmatpush1.bf16.msra.mxu1 %v845_v40 }
 0x2f9   : > { %857 = vmatprep.subr.bf16.mxu1 %v844_v41 }
 0x2fc   : > { %858 = vmatpush1.bf16.msra.mxu1 %v843_v6 }
 0x2fd   : > { %859 = vmatprep.subr.bf16.mxu1 %v842_v42 }
 0x300   : > { %860 = vmatpush1.bf16.msra.mxu1 %v841_v45 }
 0x301   : > { %861 = vmatprep.subr.bf16.mxu1 %v840_v11 }
 0x304   : > { %862 = vmatpush1.bf16.msra.mxu1 %v839_v53 }
 0x305   : > { %863 = vmatprep.subr.bf16.mxu1 %v838_v5 }
 0x308   : > { %864 = vmatpush1.bf16.msra.mxu1 %v837_v39 }
 0x309   : > { %865 = vmatprep.subr.bf16.mxu1 %v836_v63 }
 0x30c   : > { %866 = vmatpush1.bf16.msra.mxu1 %v835_v13 }
 0x33c   : > { %v732_v44 = vpop.xlane.xlu1 %731 }
 0x33d   : > { %1305 = vrcp.f32 %v732_v44 }
 0x340   : > { %v735_v43 = vpop.xlane.xlu0 %734 }
 0x341   : > { %1307 = vrcp.f32 %v735_v43 }
 0x344   : > { %v738_v8 = vpop.xlane.xlu1 %737 }
 0x345   : > { %1309 = vrcp.f32 %v738_v8 }
 0x348   : > { %v741_v28 = vpop.xlane.xlu0 %740 }
 0x349   : > { %1311 = vrcp.f32 %v741_v28 }
 0x34a   : > { %v1306_v3 = vpop.eup %1305 }
 0x34b   : > { %794 = vxpose.xlu1.b32.start [1/16] (narrow) %v1306_v3, 8 }
 0x34c   : > { %v744_v25 = vpop.xlane.xlu1 %743 }
 0x34d   : > { %1313 = vrcp.f32 %v744_v25 }
 0x34e   : > { %v1308_v2 = vpop.eup %1307 }
 0x34f   : > { %795 = vxpose.xlu1.b32.cont [2/16] (narrow) %v1308_v2, 8 }
 0x350   : > { %v747_v55 = vpop.xlane.xlu0 %746 }
 0x351   : > { %1315 = vrcp.f32 %v747_v55 }
 0x352   : > { %v1310_v60 = vpop.eup %1309 }
 0x353   : > { %796 = vxpose.xlu1.b32.cont [3/16] (narrow) %v1310_v60, 8 }
 0x354   : > { %v750_v56 = vpop.xlane.xlu1 %749 }
 0x355   : > { %1317 = vrcp.f32 %v750_v56 }
 0x356   : > { %v1312_v7 = vpop.eup %1311 }
 0x357   : > { %797 = vxpose.xlu1.b32.cont [4/16] (narrow) %v1312_v7, 8 }
 0x358   : > { %v753_v13 = vpop.xlane.xlu0 %752 }
 0x359   : > { %1319 = vrcp.f32 %v753_v13 }
 0x35a   : > { %v1314_v63 = vpop.eup %1313 }
 0x35b   : > { %798 = vxpose.xlu1.b32.cont [5/16] (narrow) %v1314_v63, 8 }
 0x35c   : > { %v756_v39 = vpop.xlane.xlu1 %755 }
 0x35d   : > { %1321 = vrcp.f32 %v756_v39 }
 0x35e   : > { %v1316_v5 = vpop.eup %1315 }
 0x35f   : > { %799 = vxpose.xlu1.b32.cont [6/16] (narrow) %v1316_v5, 8 }
 0x360   : > { %v759_v9 = vpop.xlane.xlu0 %758 }
 0x361   : > { %1323 = vrcp.f32 %v759_v9 }
 0x362   : > { %v1318_v53 = vpop.eup %1317 }
 0x363   : > { %800 = vxpose.xlu1.b32.cont [7/16] (narrow) %v1318_v53, 8 }
 0x364   : > { %v762_v11 = vpop.xlane.xlu1 %761 }
 0x365   : > { %1325 = vrcp.f32 %v762_v11 }
 0x366   : > { %v1320_v1 = vpop.eup %1319 }
 0x367   : > { %801 = vxpose.xlu1.b32.cont [8/16] (narrow) %v1320_v1, 8 }
 0x368   : > { %v765_v57 = vpop.xlane.xlu0 %764 }
 0x369   : > { %1327 = vrcp.f32 %v765_v57 }
 0x36a   : > { %v1322_v14 = vpop.eup %1321 }
 0x36b   : > { %802 = vxpose.xlu1.b32.cont [9/16] (narrow) %v1322_v14, 8 }
 0x36c   : > { %v768_v15 = vpop.xlane.xlu1 %767 }
 0x36d   : > { %1329 = vrcp.f32 %v768_v15 }
 0x36e   : > { %v1324_v17 = vpop.eup %1323 }
 0x36f   : > { %803 = vxpose.xlu1.b32.cont [10/16] (narrow) %v1324_v17, 8 }
 0x370   : > { %v771_v18 = vpop.xlane.xlu0 %770 }
 0x371   : > { %1331 = vrcp.f32 %v771_v18 }
 0x372   : > { %v1326_v20 = vpop.eup %1325 }
 0x373   : > { %804 = vxpose.xlu1.b32.cont [11/16] (narrow) %v1326_v20, 8 }
 0x374   : > { %v774_v21 = vpop.xlane.xlu1 %773 }
 0x375   : > { %1333 = vrcp.f32 %v774_v21 }
 0x376   : > { %v1328_v46 = vpop.eup %1327 }
 0x377   : > { %805 = vxpose.xlu1.b32.cont [12/16] (narrow) %v1328_v46, 8 }
 0x378   : > { %v777_v47 = vpop.xlane.xlu0 %776 }
 0x379   : > { %1335 = vrcp.f32 %v777_v47 }
 0x37a   : > { %v1330_v48 = vpop.eup %1329 }
 0x37b   : > { %806 = vxpose.xlu1.b32.cont [13/16] (narrow) %v1330_v48, 8 }
 0x37e   : > { %v1332_v49 = vpop.eup %1331 }
 0x37f   : > { %807 = vxpose.xlu1.b32.cont [14/16] (narrow) %v1332_v49, 8 }
 0x382   : > { %v1334_v23 = vpop.eup %1333 }
 0x383   : > { %808 = vxpose.xlu1.b32.cont [15/16] (narrow) %v1334_v23, 8 }
 0x386   : > { %v1336_v24 = vpop.eup %1335 }
 0x387   : > { %809 = vxpose.xlu1.b32.end [16/16] (narrow) %v1336_v24, 8 }
 0x3c7   : > { %v810_v12 = vpop.trf.xlu1 }
 0x3c8   : > { %v830_v62 = vrot.slane %v810_v12, %v829_v54 }
 0x3ca   : > { %v831_v26 = vmul.f32 %v830_v62, %v826_v59 }
 0x3cc   : > { %v832_v58 = vpack.c.bf16 %v831_v26, %v831_v26 }
 0x3ce   : > { %884 = vmatmul.mubr.bf16.vlgmr.msra.gmra.mxu1 %v832_v58 }
 0x48e   : > { %v885_v4 = vpop.f32.mrf.mxu1 }
 0x48f   : > { %v892_v10 = vadd.f32 %v885_v4, %v833_v27 }
 0x490   : > { %v887_v16 = vpop.f32.mrf.mxu1  ;;  %899 = sbr.rel (%p1162_p7) target bundleno = 1388 (0x56c), region = 52 }
 0x491   : > { %894 = vst [vmem:[#allocation5] sm:$0xff] %v892_v10  ;;  %v893_v19 = vadd.f32 %v887_v16, %v834_v61 }
 0x492   : > { %v889_v0 = vpop.f32.mrf.mxu1 }
 0x493   : > { %895 = vst [vmem:[#allocation5 + $0x8] sm:$0xff] %v893_v19 }
 0x494   : > { %v890_v29 = vpop.f32.mrf.mxu1 }
 0x495   : > { %v908_v31 = vld [vmem:[%s1793_s4] sm:$0xff]  ;;  %v910_v32 = vld [vmem:[%s1793_s4 + $0x10] sm:$0xff]  ;;  %v1382_v33 = vmov 0.0   ;;  %v909_v36 = vld [vmem:[%s1793_s4 + $0x8] sm:$0xff]  ;;  %v1383_v38 = vmov 0   ;;  %v1040_v44 = vstv %s1039_s30 }
 0x496   : > { %1014 = vmatprep.mubr.f32.mxu0 %v1382_v33  ;;  %1026 = vmatprep.mubr.f32.mxu1 %v1382_v33  ;;  %v916_v34 = vld [vmem:[%s1794_s5 + $0x10] sm:$0xff]  ;;  %v914_v35 = vld [vmem:[%s1794_s5] sm:$0xff]  ;;  %v911_v37 = vld [vmem:[%s1793_s4 + $0x18] sm:$0xff] }
 0x497   : > { %1338 = vset.pattern.permute.xlu1 %v1383_v38  ;;  %1337 = vset.pattern.permute.xlu0 %v1383_v38  ;;  %v917_v40 = vld [vmem:[%s1794_s5 + $0x18] sm:$0xff]  ;;  %v915_v41 = vld [vmem:[%s1794_s5 + $0x8] sm:$0xff]  ;;  %v900_v3 = vld [vmem:[%s1457_s8] sm:$0xff] }
 0x498   : > { %v912_v22 = vld [vmem:[#allocation5] sm:$0xff]  ;;  %930 = vperm.xlu1 %1338, %v916_v34   ;;  %920 = vperm.xlu0 %1337, %v914_v35   ;;  %v904_v25 = vld [vmem:[%s1457_s8 + $0x20] sm:$0xff]  ;;  %v901_v63 = vld [vmem:[%s1457_s8 + $0x8] sm:$0xff] }
 0x499   : > { %v905_v39 = vld [vmem:[%s1457_s8 + $0x28] sm:$0xff]  ;;  %v902_v48 = vld [vmem:[%s1457_s8 + $0x10] sm:$0xff]  ;;  %v903_v52 = vld [vmem:[%s1457_s8 + $0x18] sm:$0xff] }
 0x49a   : > { %v913_v30 = vld [vmem:[#allocation5 + $0x8] sm:$0xff]  ;;  %v906_v49 = vld [vmem:[%s1457_s8 + $0x30] sm:$0xff]  ;;  %v907_v54 = vld [vmem:[%s1457_s8 + $0x38] sm:$0xff] }
 0x49b   : > { %980 = vmatprep.subr.mxu0 %v913_v30  ;;  %1190 = vmatprep.subr.mxu1 %v913_v30 }
 0x49c   : > { %981 = vmatpush1.msra.mxu0 %v912_v22  ;;  %1191 = vmatpush1.msra.mxu1 %v912_v22 }
 0x49d   : > { %1163 = vmatmul.mubr.msk.f32.vlgmr.msra.gmra.mxu0 %vm441_vm2, %v908_v31  ;;  %1165 = vmatmul.mubr.msk.f32.vlgmr.msra.gmra.mxu1 %vm441_vm2, %v910_v32 }
 0x49e   : > { %1020 = vmatprep.mubr.f32.mxu0 %v1382_v33  ;;  %1032 = vmatprep.mubr.f32.mxu1 %v1382_v33 }
 0x49f   : > { %935 = vperm.xlu1 %1338, %v917_v40   ;;  %925 = vperm.xlu0 %1337, %v915_v41  }
 0x4a1   : > { %1164 = vmatmul.mubr.msk.f32.gmra.mxu0 %vm441_vm2, %v909_v36  ;;  %1166 = vmatmul.mubr.msk.f32.gmra.mxu1 %vm441_vm2, %v911_v37 }
 0x513   : > { %v931_v6 = vpop.permute.xlu1 %930  ;;  %v921_v42 = vpop.permute.xlu0 %920 }
 0x51a   : > { %v936_v1 = vpop.permute.xlu1 %935  ;;  %v926_v57 = vpop.permute.xlu0 %925 }
 0x55d   : > { %v1016_v45 = vpop.f32.mrf.mxu0  ;;  %v1028_v43 = vpop.f32.mrf.mxu1 }
 0x55e   : > { %v1017_v8 = vadd.f32 %v1016_v45, %v921_v42  ;;  %v1029_v28 = vadd.f32 %v1028_v43, %v931_v6 }
 0x55f   : > { %v1018_v2 = vpop.f32.mrf.mxu0  ;;  %v1030_v55 = vpop.f32.mrf.mxu1 }
 0x560   : > { %v1041_v60 = vmul.f32 %v1040_v44, %v1017_v8  ;;  %v1045_v56 = vmul.f32 %v1040_v44, %v1029_v28  ;;  %v1019_v7 = vadd.f32 %v1018_v2, %v921_v42  ;;  %v1031_v13 = vadd.f32 %v1030_v55, %v931_v6 }
 0x561   : > { %v1022_v5 = vpop.f32.mrf.mxu0  ;;  %v1034_v9 = vpop.f32.mrf.mxu1 }
 0x562   : > { %v1049_v53 = vadd.f32 %v1041_v60, %v900_v3  ;;  %v1053_v11 = vadd.f32 %v1045_v56, %v904_v25  ;;  %v1042_v14 = vmul.f32 %v1040_v44, %v1019_v7  ;;  %v1046_v15 = vmul.f32 %v1040_v44, %v1031_v13 }
 0x563   : > { %v1023_v17 = vadd.f32 %v1022_v5, %v926_v57  ;;  %v1035_v18 = vadd.f32 %v1034_v9, %v936_v1  ;;  %v1024_v20 = vpop.f32.mrf.mxu0  ;;  %v1036_v21 = vpop.f32.mrf.mxu1 }
 0x564   : > { %1057 = vst [vmem:[%s1462_s11] sm:$0xff] %v1049_v53  ;;  %1061 = vst [vmem:[%s1462_s11 + $0x20] sm:$0xff] %v1053_v11  ;;  %v1050_v46 = vadd.f32 %v1042_v14, %v901_v63  ;;  %v1054_v47 = vadd.f32 %v1046_v15, %v905_v39  ;;  %v1025_v23 = vadd.f32 %v1024_v20, %v926_v57 }
 0x565   : > { %v1037_v24 = vadd.f32 %v1036_v21, %v936_v1  ;;  %v1043_v50 = vmul.f32 %v1040_v44, %v1023_v17  ;;  %v1047_v51 = vmul.f32 %v1040_v44, %v1035_v18 }
 0x566   : > { %1058 = vst [vmem:[%s1462_s11 + $0x8] sm:$0xff] %v1050_v46  ;;  %1062 = vst [vmem:[%s1462_s11 + $0x28] sm:$0xff] %v1054_v47  ;;  %v1044_v59 = vmul.f32 %v1040_v44, %v1025_v23 }
 0x567   : > { %v1048_v12 = vmul.f32 %v1040_v44, %v1037_v24  ;;  %v1051_v62 = vadd.f32 %v1043_v50, %v902_v48  ;;  %v1055_v26 = vadd.f32 %v1047_v51, %v906_v49 }
 0x568   : > { %v1052_v58 = vadd.f32 %v1044_v59, %v903_v52 }
 0x569   : > { %v1056_v27 = vadd.f32 %v1048_v12, %v907_v54  ;;  %1059 = vst [vmem:[%s1462_s11 + $0x10] sm:$0xff] %v1051_v62  ;;  %1063 = vst [vmem:[%s1462_s11 + $0x30] sm:$0xff] %v1055_v26 }
 0x56a   : > { %1060 = vst [vmem:[%s1462_s11 + $0x18] sm:$0xff] %v1052_v58 }
 0x56b   : > { %1064 = vst [vmem:[%s1462_s11 + $0x38] sm:$0xff] %v1056_v27 }
 0x56c PF: > { %s17_s27 = sadd.s32 1, %s1377_s27   ;;  %s1796_s23 = smov %s1369_s25 }
 0x56d   : > { %p14_p8 = scmp.ge.s32.totalorder %s17_s27, 6   ;;  %s1797_s24 = smov %s1373_s26 }
 0x56e   : > { %s1798_s25 = smov %s1801_s0  ;;  %s1799_s26 = smov %s1805_s28 }
 0x56f   :  { %16 = sbr.rel (!%p14_p8) target bundleno = 3 (0x3), region = 86 }

</bundles_post_ra>
